<compile_context>
chip_gen: v7x
topology: tpu7x:2x2x1
jax: 0.10.0
libtpu: 0.0.40
codegen_flags: <defaults>
</compile_context>

<pallas_src>
import math
import functools

import jax
import jax.numpy as jnp
from jax.experimental import pallas as pl
from jax.experimental.pallas import tpu as pltpu

# ---------------------------------------------------------------------------
# Model hyper-parameters (small, consistent with the module's forward)
# ---------------------------------------------------------------------------
B = 2          # batch
S = 8          # sequence length
D_MODEL = 32   # d_model
NUM_HEADS = 4
D_K = D_MODEL // NUM_HEADS
D_FF = 64
EPS = 1e-6


# ---------------------------------------------------------------------------
# Pallas kernel: one invocation processes the whole (B*S, D) problem.
# ---------------------------------------------------------------------------
def encoder_block_kernel(x_ref,      # (B*S, D)   VMEM
                         wqkv_ref,   # (D, 3D)    VMEM  [Wq | Wk | Wv]
                         bqkv_ref,   # (1, 3D)    VMEM  [bq | bk | bv]
                         wo_ref,     # (D, D)     VMEM
                         bo_ref,     # (1, D)     VMEM
                         w1_ref,     # (D, D_FF)  VMEM
                         b1_ref,     # (1, D_FF)  VMEM
                         w2_ref,     # (D_FF, D)  VMEM
                         b2_ref,     # (1, D)     VMEM
                         lnp_ref,    # (4,)       SMEM  alpha1, beta1, alpha2, beta2
                         o_ref,      # (B*S, D)   VMEM
                         attn_sc,    # (B*S, D)   VMEM scratch (head outputs)
                         *, num_heads, d_k, batch, seq):
    x = x_ref[...].astype(jnp.float32)                     # (B*S, D)
    d = x.shape[-1]

    a1 = lnp_ref[0]
    be1 = lnp_ref[1]
    a2 = lnp_ref[2]
    be2 = lnp_ref[3]

    def layer_norm(t, alpha, beta):
        # Two-pass mean / unbiased (N-1) variance; eps added to the std, not
        # the variance -> matches the PyTorch LayerNormalization exactly.
        mean = jnp.mean(t, axis=-1, keepdims=True)
        cen = t - mean
        var = jnp.sum(cen * cen, axis=-1, keepdims=True) / float(d - 1)
        return alpha * cen / (jnp.sqrt(var) + EPS) + beta

    # ---------------- sublayer 1: self-attention on LN(x) ----------------
    ln1 = layer_norm(x, a1, be1)

    # Fused Q/K/V projection: one matmul, one bias add.
    qkv = jnp.dot(ln1, wqkv_ref[...],
                  preferred_element_type=jnp.float32) + bqkv_ref[...]
    q = qkv[:, 0 * d:1 * d]                                 # static lane slices
    k = qkv[:, 1 * d:2 * d]
    v = qkv[:, 2 * d:3 * d]

    scale = 1.0 / math.sqrt(d_k)
    nt = (((1,), (1,)), ((), ()))        # contract last axis of both (A @ B.T)

    # All (b, h) score blocks stacked along sublanes -> one softmax chain.
    blocks = []
    for b in range(batch):                                  # static loops
        rows = slice(b * seq, (b + 1) * seq)
        for h in range(num_heads):
            cols = slice(h * d_k, (h + 1) * d_k)
            sc = jax.lax.dot_general(q[rows, cols], k[rows, cols], nt,
                                     preferred_element_type=jnp.float32) * scale
            blocks.append(sc)                               # (S, S)
    scores = jnp.concatenate(blocks, axis=0)                # (B*H*S, S)
    # TODO(synk): src_mask (masked_fill with -1e9) would be applied here.
    scores = scores - jnp.max(scores, axis=-1, keepdims=True)
    e = jnp.exp(scores)
    p = e / jnp.sum(e, axis=-1, keepdims=True)              # exact softmax

    # Per-(b,h) PV matmuls; each head's (S, d_k) result is stored into its
    # static row/lane window of the (B*S, D) scratch so that the output
    # projection below is a single matmul with the original Wo.
    idx = 0
    for b in range(batch):
        rows = slice(b * seq, (b + 1) * seq)
        for h in range(num_heads):
            cols = slice(h * d_k, (h + 1) * d_k)
            pb = p[idx * seq:(idx + 1) * seq, :]            # (S, S)
            attn_sc[rows, cols] = jnp.dot(pb, v[rows, cols],
                                          preferred_element_type=jnp.float32)
            idx += 1

    x1 = x + jnp.dot(attn_sc[...], wo_ref[...],
                     preferred_element_type=jnp.float32) + bo_ref[...]

    # ---------------- sublayer 2: feed-forward on LN(x1) ----------------
    ln2 = layer_norm(x1, a2, be2)
    h1 = jnp.maximum(
        jnp.dot(ln2, w1_ref[...], preferred_element_type=jnp.float32)
        + b1_ref[...], 0.0)
    ff = jnp.dot(h1, w2_ref[...], preferred_element_type=jnp.float32) + b2_ref[...]

    o_ref[...] = (x1 + ff).astype(o_ref.dtype)              # residual 2


# ---------------------------------------------------------------------------
# Wrapper: minimal host-side stacking (QKV only) + single pallas_call
# ---------------------------------------------------------------------------
def encoder_block(x, params):
    (wq, bq, wk, bk, wv, bv, wo, bo, w1, b1, w2, b2, lnp) = params
    b, s, d = x.shape

    wqkv = jnp.concatenate([wq, wk, wv], axis=1)            # (D, 3D)
    bqkv = jnp.concatenate([bq, bk, bv], axis=1)            # (1, 3D)

    x2 = x.reshape(b * s, d)                                 # lane-dense 2-D slab

    full = lambda a: pl.BlockSpec(a.shape, lambda i: (0,) * a.ndim)

    kernel = functools.partial(encoder_block_kernel,
                               num_heads=NUM_HEADS, d_k=D_K, batch=b, seq=s)

    out = pl.pallas_call(
        kernel,
        out_shape=jax.ShapeDtypeStruct((b * s, d), x.dtype),
        grid_spec=pltpu.PrefetchScalarGridSpec(
            num_scalar_prefetch=0,
            grid=(1,),                                       # whole problem in one step
            in_specs=[
                full(x2),
                full(wqkv),
                full(bqkv),
                full(wo),
                full(bo),
                full(w1),
                full(b1),
                full(w2),
                full(b2),
                pl.BlockSpec(memory_space=pltpu.MemorySpace.SMEM),   # LN scalars
            ],
            out_specs=pl.BlockSpec((b * s, d), lambda i: (0, 0)),
            scratch_shapes=[pltpu.VMEM((b * s, d), jnp.float32)],
        ),
        compiler_params=pltpu.CompilerParams(
            dimension_semantics=("arbitrary",)),
    )(x2, wqkv, bqkv, wo, bo, w1, b1, w2, b2, lnp)
    return out.reshape(b, s, d)


# ---------------------------------------------------------------------------
# Pure-JAX reference (same math) for correctness check
# ---------------------------------------------------------------------------
def reference(x, params):
    (wq, bq, wk, bk, wv, bv, wo, bo, w1, b1, w2, b2, lnp) = params

    def ln(t, alpha, beta):
        mean = jnp.mean(t, axis=-1, keepdims=True)
        var = jnp.sum((t - mean) ** 2, axis=-1, keepdims=True) / (t.shape[-1] - 1)
        return alpha * (t - mean) / (jnp.sqrt(var) + EPS) + beta

    l1 = ln(x, lnp[0], lnp[1])
    q = l1 @ wq + bq[0]
    k = l1 @ wk + bk[0]
    v = l1 @ wv + bv[0]

    def split(t):  # (B,S,D) -> (B,H,S,dk)
        return t.reshape(B, S, NUM_HEADS, D_K).transpose(0, 2, 1, 3)

    qh, kh, vh = split(q), split(k), split(v)
    scores = jnp.einsum("bhqd,bhkd->bhqk", qh, kh) / math.sqrt(D_K)
    p = jax.nn.softmax(scores, axis=-1)
    attn = jnp.einsum("bhqk,bhkd->bhqd", p, vh)
    attn = attn.transpose(0, 2, 1, 3).reshape(B, S, D_MODEL)
    x1 = x + (attn @ wo + bo[0])

    l2 = ln(x1, lnp[2], lnp[3])
    ff = jnp.maximum(l2 @ w1 + b1[0], 0.0) @ w2 + b2[0]
    return x1 + ff


# ---------------------------------------------------------------------------
# Deterministic parameter init (nn.Linear weights stored as (in, out), i.e.
# already transposed relative to PyTorch's (out, in)).
# ---------------------------------------------------------------------------
def init_params(key):
    ks = jax.random.split(key, 12)

    def lin(kw, kb, d_in, d_out):
        bound = 1.0 / math.sqrt(d_in)
        w = jax.random.uniform(kw, (d_in, d_out), jnp.float32, -bound, bound)
        b = jax.random.uniform(kb, (1, d_out), jnp.float32, -bound, bound)
        return w, b

    wq, bq = lin(ks[0], ks[1], D_MODEL, D_MODEL)
    wk, bk = lin(ks[2], ks[3], D_MODEL, D_MODEL)
    wv, bv = lin(ks[4], ks[5], D_MODEL, D_MODEL)
    wo, bo = lin(ks[6], ks[7], D_MODEL, D_MODEL)
    w1, b1 = lin(ks[8], ks[9], D_MODEL, D_FF)
    w2, b2 = lin(ks[10], ks[11], D_FF, D_MODEL)
    # LayerNormalization params for both residual connections: alpha=1, beta=0.
    lnp = jnp.array([1.0, 0.0, 1.0, 0.0], dtype=jnp.float32)
    return (wq, bq, wk, bk, wv, bv, wo, bo, w1, b1, w2, b2, lnp)


if __name__ == "__main__":
    key = jax.random.PRNGKey(0)
    kx, kp = jax.random.split(key)
    x = jax.random.normal(kx, (B, S, D_MODEL), dtype=jnp.float32)
    params = init_params(kp)

    out = encoder_block(x, params)
    out = jax.block_until_ready(out)

    ref = reference(x, params)
    assert out.shape == (B, S, D_MODEL)
    # Exact softmax division now; tolerance only covers MXU f32-pass rounding
    # differences vs the XLA reference dot.
    assert jnp.allclose(out, ref, atol=1e-4, rtol=1e-4), (
        float(jnp.max(jnp.abs(out - ref))))

    print("KERNEL_OK")
</pallas_src>

<mosaic_0001>
module attributes {stable_mosaic.version = 11 : i64} {
  func.func @encoder_block_kernel(%arg0: i32, %arg1: memref<16x32xf32, #tpu.memory_space<vmem>>, %arg2: memref<32x96xf32, #tpu.memory_space<vmem>>, %arg3: memref<1x96xf32, #tpu.memory_space<vmem>>, %arg4: memref<32x32xf32, #tpu.memory_space<vmem>>, %arg5: memref<1x32xf32, #tpu.memory_space<vmem>>, %arg6: memref<32x64xf32, #tpu.memory_space<vmem>>, %arg7: memref<1x64xf32, #tpu.memory_space<vmem>>, %arg8: memref<64x32xf32, #tpu.memory_space<vmem>>, %arg9: memref<1x32xf32, #tpu.memory_space<vmem>>, %arg10: memref<4xf32, #tpu.memory_space<smem>>, %arg11: memref<16x32xf32, #tpu.memory_space<vmem>>, %arg12: memref<16x32xf32, #tpu.memory_space<vmem>>) attributes {dimension_semantics = [#tpu.dimension_semantics<arbitrary>], iteration_bounds = array<i64: 1>, scalar_prefetch = 0 : i64, scratch_operands = 1 : i64, tpu.core_type = #tpu.core_type<tc>, window_params = [{pipeline_mode = #tpu.pipeline_mode<synchronous>, transform_indices = @transform_0, window_bounds = array<i64: 16, 32>}, {pipeline_mode = #tpu.pipeline_mode<synchronous>, transform_indices = @transform_1, window_bounds = array<i64: 32, 96>}, {pipeline_mode = #tpu.pipeline_mode<synchronous>, transform_indices = @transform_2, window_bounds = array<i64: 1, 96>}, {pipeline_mode = #tpu.pipeline_mode<synchronous>, transform_indices = @transform_3, window_bounds = array<i64: 32, 32>}, {pipeline_mode = #tpu.pipeline_mode<synchronous>, transform_indices = @transform_4, window_bounds = array<i64: 1, 32>}, {pipeline_mode = #tpu.pipeline_mode<synchronous>, transform_indices = @transform_5, window_bounds = array<i64: 32, 64>}, {pipeline_mode = #tpu.pipeline_mode<synchronous>, transform_indices = @transform_6, window_bounds = array<i64: 1, 64>}, {pipeline_mode = #tpu.pipeline_mode<synchronous>, transform_indices = @transform_7, window_bounds = array<i64: 64, 32>}, {pipeline_mode = #tpu.pipeline_mode<synchronous>, transform_indices = @transform_8, window_bounds = array<i64: 1, 32>}, {transform_indices = @transform_9, window_bounds = array<i64: 4>}, {pipeline_mode = #tpu.pipeline_mode<synchronous>, transform_indices = @transform_10, window_bounds = array<i64: 16, 32>}]} {
    %c0 = arith.constant 0 : index
    %c0_0 = arith.constant 0 : index
    %0 = vector.load %arg1[%c0, %c0_0] : memref<16x32xf32, #tpu.memory_space<vmem>>, vector<16x32xf32>
    %c0_1 = arith.constant 0 : index
    %1 = memref.load %arg10[%c0_1] : memref<4xf32, #tpu.memory_space<smem>>
    %c1 = arith.constant 1 : index
    %2 = memref.load %arg10[%c1] : memref<4xf32, #tpu.memory_space<smem>>
    %c2 = arith.constant 2 : index
    %3 = memref.load %arg10[%c2] : memref<4xf32, #tpu.memory_space<smem>>
    %c3 = arith.constant 3 : index
    %4 = memref.load %arg10[%c3] : memref<4xf32, #tpu.memory_space<smem>>
    %cst = arith.constant dense<0.000000e+00> : vector<16xf32>
    %5 = vector.multi_reduction <add>, %0, %cst [1] : vector<16x32xf32> to vector<16xf32>
    %6 = vector.shape_cast %5 : vector<16xf32> to vector<16x1xf32>
    %cst_2 = arith.constant 3.200000e+01 : f32
    %7 = vector.broadcast %cst_2 : f32 to vector<16x1xf32>
    %8 = arith.divf %6, %7 : vector<16x1xf32>
    %9 = vector.broadcast %8 : vector<16x1xf32> to vector<16x32xf32>
    %10 = arith.subf %0, %9 : vector<16x32xf32>
    %11 = arith.mulf %10, %10 : vector<16x32xf32>
    %cst_3 = arith.constant dense<0.000000e+00> : vector<16xf32>
    %12 = vector.multi_reduction <add>, %11, %cst_3 [1] : vector<16x32xf32> to vector<16xf32>
    %13 = vector.shape_cast %12 : vector<16xf32> to vector<16x1xf32>
    %cst_4 = arith.constant 3.100000e+01 : f32
    %14 = vector.broadcast %cst_4 : f32 to vector<16x1xf32>
    %15 = arith.divf %13, %14 : vector<16x1xf32>
    %16 = vector.broadcast %1 : f32 to vector<16x32xf32>
    %17 = arith.mulf %16, %10 : vector<16x32xf32>
    %18 = math.sqrt %15 : vector<16x1xf32>
    %cst_5 = arith.constant 9.99999997E-7 : f32
    %19 = vector.broadcast %cst_5 : f32 to vector<16x1xf32>
    %20 = arith.addf %18, %19 : vector<16x1xf32>
    %21 = vector.broadcast %20 : vector<16x1xf32> to vector<16x32xf32>
    %22 = arith.divf %17, %21 : vector<16x32xf32>
    %23 = vector.broadcast %2 : f32 to vector<16x32xf32>
    %24 = arith.addf %22, %23 : vector<16x32xf32>
    %c0_6 = arith.constant 0 : index
    %c0_7 = arith.constant 0 : index
    %25 = vector.load %arg2[%c0_6, %c0_7] : memref<32x96xf32, #tpu.memory_space<vmem>>, vector<32x96xf32>
    %cst_8 = arith.constant dense<0.000000e+00> : vector<16x96xf32>
    %26 = tpu.matmul %24, %25, %cst_8 {dimension_numbers = #tpu.dot_dimension_numbers<[1], [0], [0], [1], [0, 0, 1, 1], [], []>} : vector<16x32xf32>, vector<32x96xf32>, vector<16x96xf32> -> vector<16x96xf32>
    %c0_9 = arith.constant 0 : index
    %c0_10 = arith.constant 0 : index
    %27 = vector.load %arg3[%c0_9, %c0_10] : memref<1x96xf32, #tpu.memory_space<vmem>>, vector<1x96xf32>
    %28 = vector.broadcast %27 : vector<1x96xf32> to vector<16x96xf32>
    %29 = arith.addf %26, %28 : vector<16x96xf32>
    %30 = vector.extract_strided_slice %29 {offsets = [0, 0], sizes = [16, 32], strides = [1, 1]} : vector<16x96xf32> to vector<16x32xf32>
    %31 = vector.extract_strided_slice %29 {offsets = [0, 32], sizes = [16, 32], strides = [1, 1]} : vector<16x96xf32> to vector<16x32xf32>
    %32 = vector.extract_strided_slice %29 {offsets = [0, 64], sizes = [16, 32], strides = [1, 1]} : vector<16x96xf32> to vector<16x32xf32>
    %33 = vector.extract_strided_slice %30 {offsets = [0, 0], sizes = [8, 8], strides = [1, 1]} : vector<16x32xf32> to vector<8x8xf32>
    %34 = vector.extract_strided_slice %31 {offsets = [0, 0], sizes = [8, 8], strides = [1, 1]} : vector<16x32xf32> to vector<8x8xf32>
    %cst_11 = arith.constant dense<0.000000e+00> : vector<8x8xf32>
    %35 = tpu.matmul %33, %34, %cst_11 {dimension_numbers = #tpu.dot_dimension_numbers<[1], [1], [0], [0], [0, 0, 1, 0], [], []>} : vector<8x8xf32>, vector<8x8xf32>, vector<8x8xf32> -> vector<8x8xf32>
    %cst_12 = arith.constant 0.353553385 : f32
    %36 = vector.broadcast %cst_12 : f32 to vector<8x8xf32>
    %37 = arith.mulf %35, %36 : vector<8x8xf32>
    %38 = vector.extract_strided_slice %30 {offsets = [0, 8], sizes = [8, 8], strides = [1, 1]} : vector<16x32xf32> to vector<8x8xf32>
    %39 = vector.extract_strided_slice %31 {offsets = [0, 8], sizes = [8, 8], strides = [1, 1]} : vector<16x32xf32> to vector<8x8xf32>
    %cst_13 = arith.constant dense<0.000000e+00> : vector<8x8xf32>
    %40 = tpu.matmul %38, %39, %cst_13 {dimension_numbers = #tpu.dot_dimension_numbers<[1], [1], [0], [0], [0, 0, 1, 0], [], []>} : vector<8x8xf32>, vector<8x8xf32>, vector<8x8xf32> -> vector<8x8xf32>
    %cst_14 = arith.constant 0.353553385 : f32
    %41 = vector.broadcast %cst_14 : f32 to vector<8x8xf32>
    %42 = arith.mulf %40, %41 : vector<8x8xf32>
    %43 = vector.extract_strided_slice %30 {offsets = [0, 16], sizes = [8, 8], strides = [1, 1]} : vector<16x32xf32> to vector<8x8xf32>
    %44 = vector.extract_strided_slice %31 {offsets = [0, 16], sizes = [8, 8], strides = [1, 1]} : vector<16x32xf32> to vector<8x8xf32>
    %cst_15 = arith.constant dense<0.000000e+00> : vector<8x8xf32>
    %45 = tpu.matmul %43, %44, %cst_15 {dimension_numbers = #tpu.dot_dimension_numbers<[1], [1], [0], [0], [0, 0, 1, 0], [], []>} : vector<8x8xf32>, vector<8x8xf32>, vector<8x8xf32> -> vector<8x8xf32>
    %cst_16 = arith.constant 0.353553385 : f32
    %46 = vector.broadcast %cst_16 : f32 to vector<8x8xf32>
    %47 = arith.mulf %45, %46 : vector<8x8xf32>
    %48 = vector.extract_strided_slice %30 {offsets = [0, 24], sizes = [8, 8], strides = [1, 1]} : vector<16x32xf32> to vector<8x8xf32>
    %49 = vector.extract_strided_slice %31 {offsets = [0, 24], sizes = [8, 8], strides = [1, 1]} : vector<16x32xf32> to vector<8x8xf32>
    %cst_17 = arith.constant dense<0.000000e+00> : vector<8x8xf32>
    %50 = tpu.matmul %48, %49, %cst_17 {dimension_numbers = #tpu.dot_dimension_numbers<[1], [1], [0], [0], [0, 0, 1, 0], [], []>} : vector<8x8xf32>, vector<8x8xf32>, vector<8x8xf32> -> vector<8x8xf32>
    %cst_18 = arith.constant 0.353553385 : f32
    %51 = vector.broadcast %cst_18 : f32 to vector<8x8xf32>
    %52 = arith.mulf %50, %51 : vector<8x8xf32>
    %53 = vector.extract_strided_slice %30 {offsets = [8, 0], sizes = [8, 8], strides = [1, 1]} : vector<16x32xf32> to vector<8x8xf32>
    %54 = vector.extract_strided_slice %31 {offsets = [8, 0], sizes = [8, 8], strides = [1, 1]} : vector<16x32xf32> to vector<8x8xf32>
    %cst_19 = arith.constant dense<0.000000e+00> : vector<8x8xf32>
    %55 = tpu.matmul %53, %54, %cst_19 {dimension_numbers = #tpu.dot_dimension_numbers<[1], [1], [0], [0], [0, 0, 1, 0], [], []>} : vector<8x8xf32>, vector<8x8xf32>, vector<8x8xf32> -> vector<8x8xf32>
    %cst_20 = arith.constant 0.353553385 : f32
    %56 = vector.broadcast %cst_20 : f32 to vector<8x8xf32>
    %57 = arith.mulf %55, %56 : vector<8x8xf32>
    %58 = vector.extract_strided_slice %30 {offsets = [8, 8], sizes = [8, 8], strides = [1, 1]} : vector<16x32xf32> to vector<8x8xf32>
    %59 = vector.extract_strided_slice %31 {offsets = [8, 8], sizes = [8, 8], strides = [1, 1]} : vector<16x32xf32> to vector<8x8xf32>
    %cst_21 = arith.constant dense<0.000000e+00> : vector<8x8xf32>
    %60 = tpu.matmul %58, %59, %cst_21 {dimension_numbers = #tpu.dot_dimension_numbers<[1], [1], [0], [0], [0, 0, 1, 0], [], []>} : vector<8x8xf32>, vector<8x8xf32>, vector<8x8xf32> -> vector<8x8xf32>
    %cst_22 = arith.constant 0.353553385 : f32
    %61 = vector.broadcast %cst_22 : f32 to vector<8x8xf32>
    %62 = arith.mulf %60, %61 : vector<8x8xf32>
    %63 = vector.extract_strided_slice %30 {offsets = [8, 16], sizes = [8, 8], strides = [1, 1]} : vector<16x32xf32> to vector<8x8xf32>
    %64 = vector.extract_strided_slice %31 {offsets = [8, 16], sizes = [8, 8], strides = [1, 1]} : vector<16x32xf32> to vector<8x8xf32>
    %cst_23 = arith.constant dense<0.000000e+00> : vector<8x8xf32>
    %65 = tpu.matmul %63, %64, %cst_23 {dimension_numbers = #tpu.dot_dimension_numbers<[1], [1], [0], [0], [0, 0, 1, 0], [], []>} : vector<8x8xf32>, vector<8x8xf32>, vector<8x8xf32> -> vector<8x8xf32>
    %cst_24 = arith.constant 0.353553385 : f32
    %66 = vector.broadcast %cst_24 : f32 to vector<8x8xf32>
    %67 = arith.mulf %65, %66 : vector<8x8xf32>
    %68 = vector.extract_strided_slice %30 {offsets = [8, 24], sizes = [8, 8], strides = [1, 1]} : vector<16x32xf32> to vector<8x8xf32>
    %69 = vector.extract_strided_slice %31 {offsets = [8, 24], sizes = [8, 8], strides = [1, 1]} : vector<16x32xf32> to vector<8x8xf32>
    %cst_25 = arith.constant dense<0.000000e+00> : vector<8x8xf32>
    %70 = tpu.matmul %68, %69, %cst_25 {dimension_numbers = #tpu.dot_dimension_numbers<[1], [1], [0], [0], [0, 0, 1, 0], [], []>} : vector<8x8xf32>, vector<8x8xf32>, vector<8x8xf32> -> vector<8x8xf32>
    %cst_26 = arith.constant 0.353553385 : f32
    %71 = vector.broadcast %cst_26 : f32 to vector<8x8xf32>
    %72 = arith.mulf %70, %71 : vector<8x8xf32>
    %73 = tpu.concatenate %37, %42, %47, %52, %57, %62, %67, %72 in 0 : vector<8x8xf32>, vector<8x8xf32>, vector<8x8xf32>, vector<8x8xf32>, vector<8x8xf32>, vector<8x8xf32>, vector<8x8xf32>, vector<8x8xf32> -> vector<64x8xf32>
    %cst_27 = arith.constant dense<0xFF800000> : vector<64xf32>
    %74 = vector.multi_reduction <maximumf>, %73, %cst_27 [1] : vector<64x8xf32> to vector<64xf32>
    %75 = vector.shape_cast %74 : vector<64xf32> to vector<64x1xf32>
    %76 = vector.broadcast %75 : vector<64x1xf32> to vector<64x8xf32>
    %77 = arith.subf %73, %76 : vector<64x8xf32>
    %78 = math.exp %77 : vector<64x8xf32>
    %cst_28 = arith.constant dense<0.000000e+00> : vector<64xf32>
    %79 = vector.multi_reduction <add>, %78, %cst_28 [1] : vector<64x8xf32> to vector<64xf32>
    %80 = vector.shape_cast %79 : vector<64xf32> to vector<64x1xf32>
    %81 = vector.broadcast %80 : vector<64x1xf32> to vector<64x8xf32>
    %82 = arith.divf %78, %81 : vector<64x8xf32>
    %83 = vector.extract_strided_slice %82 {offsets = [0, 0], sizes = [8, 8], strides = [1, 1]} : vector<64x8xf32> to vector<8x8xf32>
    %84 = vector.extract_strided_slice %32 {offsets = [0, 0], sizes = [8, 8], strides = [1, 1]} : vector<16x32xf32> to vector<8x8xf32>
    %cst_29 = arith.constant dense<0.000000e+00> : vector<8x8xf32>
    %85 = tpu.matmul %83, %84, %cst_29 {dimension_numbers = #tpu.dot_dimension_numbers<[1], [0], [0], [1], [0, 0, 1, 1], [], []>} : vector<8x8xf32>, vector<8x8xf32>, vector<8x8xf32> -> vector<8x8xf32>
    %c0_30 = arith.constant 0 : index
    %c0_31 = arith.constant 0 : index
    %86 = vector.load %arg12[%c0_30, %c0_31] : memref<16x32xf32, #tpu.memory_space<vmem>>, vector<8x8xf32>
    tpu.vector_store %arg12[%c0_30, %c0_31], %85 {strides = array<i32>} : memref<16x32xf32, #tpu.memory_space<vmem>>, vector<8x8xf32>,
    %87 = vector.extract_strided_slice %82 {offsets = [8, 0], sizes = [8, 8], strides = [1, 1]} : vector<64x8xf32> to vector<8x8xf32>
    %88 = vector.extract_strided_slice %32 {offsets = [0, 8], sizes = [8, 8], strides = [1, 1]} : vector<16x32xf32> to vector<8x8xf32>
    %cst_32 = arith.constant dense<0.000000e+00> : vector<8x8xf32>
    %89 = tpu.matmul %87, %88, %cst_32 {dimension_numbers = #tpu.dot_dimension_numbers<[1], [0], [0], [1], [0, 0, 1, 1], [], []>} : vector<8x8xf32>, vector<8x8xf32>, vector<8x8xf32> -> vector<8x8xf32>
    %c0_33 = arith.constant 0 : index
    %c8 = arith.constant 8 : index
    %90 = vector.load %arg12[%c0_33, %c8] : memref<16x32xf32, #tpu.memory_space<vmem>>, vector<8x8xf32>
    tpu.vector_store %arg12[%c0_33, %c8], %89 {strides = array<i32>} : memref<16x32xf32, #tpu.memory_space<vmem>>, vector<8x8xf32>,
    %91 = vector.extract_strided_slice %82 {offsets = [16, 0], sizes = [8, 8], strides = [1, 1]} : vector<64x8xf32> to vector<8x8xf32>
    %92 = vector.extract_strided_slice %32 {offsets = [0, 16], sizes = [8, 8], strides = [1, 1]} : vector<16x32xf32> to vector<8x8xf32>
    %cst_34 = arith.constant dense<0.000000e+00> : vector<8x8xf32>
    %93 = tpu.matmul %91, %92, %cst_34 {dimension_numbers = #tpu.dot_dimension_numbers<[1], [0], [0], [1], [0, 0, 1, 1], [], []>} : vector<8x8xf32>, vector<8x8xf32>, vector<8x8xf32> -> vector<8x8xf32>
    %c0_35 = arith.constant 0 : index
    %c16 = arith.constant 16 : index
    %94 = vector.load %arg12[%c0_35, %c16] : memref<16x32xf32, #tpu.memory_space<vmem>>, vector<8x8xf32>
    tpu.vector_store %arg12[%c0_35, %c16], %93 {strides = array<i32>} : memref<16x32xf32, #tpu.memory_space<vmem>>, vector<8x8xf32>,
    %95 = vector.extract_strided_slice %82 {offsets = [24, 0], sizes = [8, 8], strides = [1, 1]} : vector<64x8xf32> to vector<8x8xf32>
    %96 = vector.extract_strided_slice %32 {offsets = [0, 24], sizes = [8, 8], strides = [1, 1]} : vector<16x32xf32> to vector<8x8xf32>
    %cst_36 = arith.constant dense<0.000000e+00> : vector<8x8xf32>
    %97 = tpu.matmul %95, %96, %cst_36 {dimension_numbers = #tpu.dot_dimension_numbers<[1], [0], [0], [1], [0, 0, 1, 1], [], []>} : vector<8x8xf32>, vector<8x8xf32>, vector<8x8xf32> -> vector<8x8xf32>
    %c0_37 = arith.constant 0 : index
    %c24 = arith.constant 24 : index
    %98 = vector.load %arg12[%c0_37, %c24] : memref<16x32xf32, #tpu.memory_space<vmem>>, vector<8x8xf32>
    tpu.vector_store %arg12[%c0_37, %c24], %97 {strides = array<i32>} : memref<16x32xf32, #tpu.memory_space<vmem>>, vector<8x8xf32>,
    %99 = vector.extract_strided_slice %82 {offsets = [32, 0], sizes = [8, 8], strides = [1, 1]} : vector<64x8xf32> to vector<8x8xf32>
    %100 = vector.extract_strided_slice %32 {offsets = [8, 0], sizes = [8, 8], strides = [1, 1]} : vector<16x32xf32> to vector<8x8xf32>
    %cst_38 = arith.constant dense<0.000000e+00> : vector<8x8xf32>
    %101 = tpu.matmul %99, %100, %cst_38 {dimension_numbers = #tpu.dot_dimension_numbers<[1], [0], [0], [1], [0, 0, 1, 1], [], []>} : vector<8x8xf32>, vector<8x8xf32>, vector<8x8xf32> -> vector<8x8xf32>
    %c8_39 = arith.constant 8 : index
    %c0_40 = arith.constant 0 : index
    %102 = vector.load %arg12[%c8_39, %c0_40] : memref<16x32xf32, #tpu.memory_space<vmem>>, vector<8x8xf32>
    tpu.vector_store %arg12[%c8_39, %c0_40], %101 {strides = array<i32>} : memref<16x32xf32, #tpu.memory_space<vmem>>, vector<8x8xf32>,
    %103 = vector.extract_strided_slice %82 {offsets = [40, 0], sizes = [8, 8], strides = [1, 1]} : vector<64x8xf32> to vector<8x8xf32>
    %104 = vector.extract_strided_slice %32 {offsets = [8, 8], sizes = [8, 8], strides = [1, 1]} : vector<16x32xf32> to vector<8x8xf32>
    %cst_41 = arith.constant dense<0.000000e+00> : vector<8x8xf32>
    %105 = tpu.matmul %103, %104, %cst_41 {dimension_numbers = #tpu.dot_dimension_numbers<[1], [0], [0], [1], [0, 0, 1, 1], [], []>} : vector<8x8xf32>, vector<8x8xf32>, vector<8x8xf32> -> vector<8x8xf32>
    %c8_42 = arith.constant 8 : index
    %c8_43 = arith.constant 8 : index
    %106 = vector.load %arg12[%c8_42, %c8_43] : memref<16x32xf32, #tpu.memory_space<vmem>>, vector<8x8xf32>
    tpu.vector_store %arg12[%c8_42, %c8_43], %105 {strides = array<i32>} : memref<16x32xf32, #tpu.memory_space<vmem>>, vector<8x8xf32>,
    %107 = vector.extract_strided_slice %82 {offsets = [48, 0], sizes = [8, 8], strides = [1, 1]} : vector<64x8xf32> to vector<8x8xf32>
    %108 = vector.extract_strided_slice %32 {offsets = [8, 16], sizes = [8, 8], strides = [1, 1]} : vector<16x32xf32> to vector<8x8xf32>
    %cst_44 = arith.constant dense<0.000000e+00> : vector<8x8xf32>
    %109 = tpu.matmul %107, %108, %cst_44 {dimension_numbers = #tpu.dot_dimension_numbers<[1], [0], [0], [1], [0, 0, 1, 1], [], []>} : vector<8x8xf32>, vector<8x8xf32>, vector<8x8xf32> -> vector<8x8xf32>
    %c8_45 = arith.constant 8 : index
    %c16_46 = arith.constant 16 : index
    %110 = vector.load %arg12[%c8_45, %c16_46] : memref<16x32xf32, #tpu.memory_space<vmem>>, vector<8x8xf32>
    tpu.vector_store %arg12[%c8_45, %c16_46], %109 {strides = array<i32>} : memref<16x32xf32, #tpu.memory_space<vmem>>, vector<8x8xf32>,
    %111 = vector.extract_strided_slice %82 {offsets = [56, 0], sizes = [8, 8], strides = [1, 1]} : vector<64x8xf32> to vector<8x8xf32>
    %112 = vector.extract_strided_slice %32 {offsets = [8, 24], sizes = [8, 8], strides = [1, 1]} : vector<16x32xf32> to vector<8x8xf32>
    %cst_47 = arith.constant dense<0.000000e+00> : vector<8x8xf32>
    %113 = tpu.matmul %111, %112, %cst_47 {dimension_numbers = #tpu.dot_dimension_numbers<[1], [0], [0], [1], [0, 0, 1, 1], [], []>} : vector<8x8xf32>, vector<8x8xf32>, vector<8x8xf32> -> vector<8x8xf32>
    %c8_48 = arith.constant 8 : index
    %c24_49 = arith.constant 24 : index
    %114 = vector.load %arg12[%c8_48, %c24_49] : memref<16x32xf32, #tpu.memory_space<vmem>>, vector<8x8xf32>
    tpu.vector_store %arg12[%c8_48, %c24_49], %113 {strides = array<i32>} : memref<16x32xf32, #tpu.memory_space<vmem>>, vector<8x8xf32>,
    %c0_50 = arith.constant 0 : index
    %c0_51 = arith.constant 0 : index
    %115 = vector.load %arg12[%c0_50, %c0_51] : memref<16x32xf32, #tpu.memory_space<vmem>>, vector<16x32xf32>
    %c0_52 = arith.constant 0 : index
    %c0_53 = arith.constant 0 : index
    %116 = vector.load %arg4[%c0_52, %c0_53] : memref<32x32xf32, #tpu.memory_space<vmem>>, vector<32x32xf32>
    %cst_54 = arith.constant dense<0.000000e+00> : vector<16x32xf32>
    %117 = tpu.matmul %115, %116, %cst_54 {dimension_numbers = #tpu.dot_dimension_numbers<[1], [0], [0], [1], [0, 0, 1, 1], [], []>} : vector<16x32xf32>, vector<32x32xf32>, vector<16x32xf32> -> vector<16x32xf32>
    %118 = arith.addf %0, %117 : vector<16x32xf32>
    %c0_55 = arith.constant 0 : index
    %c0_56 = arith.constant 0 : index
    %119 = vector.load %arg5[%c0_55, %c0_56] : memref<1x32xf32, #tpu.memory_space<vmem>>, vector<1x32xf32>
    %120 = vector.broadcast %119 : vector<1x32xf32> to vector<16x32xf32>
    %121 = arith.addf %118, %120 : vector<16x32xf32>
    %cst_57 = arith.constant dense<0.000000e+00> : vector<16xf32>
    %122 = vector.multi_reduction <add>, %121, %cst_57 [1] : vector<16x32xf32> to vector<16xf32>
    %123 = vector.shape_cast %122 : vector<16xf32> to vector<16x1xf32>
    %cst_58 = arith.constant 3.200000e+01 : f32
    %124 = vector.broadcast %cst_58 : f32 to vector<16x1xf32>
    %125 = arith.divf %123, %124 : vector<16x1xf32>
    %126 = vector.broadcast %125 : vector<16x1xf32> to vector<16x32xf32>
    %127 = arith.subf %121, %126 : vector<16x32xf32>
    %128 = arith.mulf %127, %127 : vector<16x32xf32>
    %cst_59 = arith.constant dense<0.000000e+00> : vector<16xf32>
    %129 = vector.multi_reduction <add>, %128, %cst_59 [1] : vector<16x32xf32> to vector<16xf32>
    %130 = vector.shape_cast %129 : vector<16xf32> to vector<16x1xf32>
    %cst_60 = arith.constant 3.100000e+01 : f32
    %131 = vector.broadcast %cst_60 : f32 to vector<16x1xf32>
    %132 = arith.divf %130, %131 : vector<16x1xf32>
    %133 = vector.broadcast %3 : f32 to vector<16x32xf32>
    %134 = arith.mulf %133, %127 : vector<16x32xf32>
    %135 = math.sqrt %132 : vector<16x1xf32>
    %cst_61 = arith.constant 9.99999997E-7 : f32
    %136 = vector.broadcast %cst_61 : f32 to vector<16x1xf32>
    %137 = arith.addf %135, %136 : vector<16x1xf32>
    %138 = vector.broadcast %137 : vector<16x1xf32> to vector<16x32xf32>
    %139 = arith.divf %134, %138 : vector<16x32xf32>
    %140 = vector.broadcast %4 : f32 to vector<16x32xf32>
    %141 = arith.addf %139, %140 : vector<16x32xf32>
    %c0_62 = arith.constant 0 : index
    %c0_63 = arith.constant 0 : index
    %142 = vector.load %arg6[%c0_62, %c0_63] : memref<32x64xf32, #tpu.memory_space<vmem>>, vector<32x64xf32>
    %cst_64 = arith.constant dense<0.000000e+00> : vector<16x64xf32>
    %143 = tpu.matmul %141, %142, %cst_64 {dimension_numbers = #tpu.dot_dimension_numbers<[1], [0], [0], [1], [0, 0, 1, 1], [], []>} : vector<16x32xf32>, vector<32x64xf32>, vector<16x64xf32> -> vector<16x64xf32>
    %c0_65 = arith.constant 0 : index
    %c0_66 = arith.constant 0 : index
    %144 = vector.load %arg7[%c0_65, %c0_66] : memref<1x64xf32, #tpu.memory_space<vmem>>, vector<1x64xf32>
    %145 = vector.broadcast %144 : vector<1x64xf32> to vector<16x64xf32>
    %146 = arith.addf %143, %145 : vector<16x64xf32>
    %cst_67 = arith.constant 0.000000e+00 : f32
    %147 = vector.broadcast %cst_67 : f32 to vector<16x64xf32>
    %148 = arith.maximumf %146, %147 : vector<16x64xf32>
    %c0_68 = arith.constant 0 : index
    %c0_69 = arith.constant 0 : index
    %149 = vector.load %arg8[%c0_68, %c0_69] : memref<64x32xf32, #tpu.memory_space<vmem>>, vector<64x32xf32>
    %cst_70 = arith.constant dense<0.000000e+00> : vector<16x32xf32>
    %150 = tpu.matmul %148, %149, %cst_70 {dimension_numbers = #tpu.dot_dimension_numbers<[1], [0], [0], [1], [0, 0, 1, 1], [], []>} : vector<16x64xf32>, vector<64x32xf32>, vector<16x32xf32> -> vector<16x32xf32>
    %c0_71 = arith.constant 0 : index
    %c0_72 = arith.constant 0 : index
    %151 = vector.load %arg9[%c0_71, %c0_72] : memref<1x32xf32, #tpu.memory_space<vmem>>, vector<1x32xf32>
    %152 = vector.broadcast %151 : vector<1x32xf32> to vector<16x32xf32>
    %153 = arith.addf %150, %152 : vector<16x32xf32>
    %154 = arith.addf %121, %153 : vector<16x32xf32>
    %c0_73 = arith.constant 0 : index
    %c0_74 = arith.constant 0 : index
    %155 = vector.load %arg11[%c0_73, %c0_74] : memref<16x32xf32, #tpu.memory_space<vmem>>, vector<16x32xf32>
    tpu.vector_store %arg11[%c0_73, %c0_74], %154 {strides = array<i32>} : memref<16x32xf32, #tpu.memory_space<vmem>>, vector<16x32xf32>,
    return
  }
  func.func @transform_0(%arg0: i32) -> (i32, i32) {
    %c0_i32 = arith.constant 0 : i32
    %c0_i32_0 = arith.constant 0 : i32
    %c0_i32_1 = arith.constant 0 : i32
    return %c0_i32, %c0_i32_0 : i32, i32
  }
  func.func @transform_1(%arg0: i32) -> (i32, i32) {
    %c0_i32 = arith.constant 0 : i32
    %c0_i32_0 = arith.constant 0 : i32
    %c0_i32_1 = arith.constant 0 : i32
    return %c0_i32, %c0_i32_0 : i32, i32
  }
  func.func @transform_2(%arg0: i32) -> (i32, i32) {
    %c0_i32 = arith.constant 0 : i32
    %c0_i32_0 = arith.constant 0 : i32
    %c0_i32_1 = arith.constant 0 : i32
    return %c0_i32, %c0_i32_0 : i32, i32
  }
  func.func @transform_3(%arg0: i32) -> (i32, i32) {
    %c0_i32 = arith.constant 0 : i32
    %c0_i32_0 = arith.constant 0 : i32
    %c0_i32_1 = arith.constant 0 : i32
    return %c0_i32, %c0_i32_0 : i32, i32
  }
  func.func @transform_4(%arg0: i32) -> (i32, i32) {
    %c0_i32 = arith.constant 0 : i32
    %c0_i32_0 = arith.constant 0 : i32
    %c0_i32_1 = arith.constant 0 : i32
    return %c0_i32, %c0_i32_0 : i32, i32
  }
  func.func @transform_5(%arg0: i32) -> (i32, i32) {
    %c0_i32 = arith.constant 0 : i32
    %c0_i32_0 = arith.constant 0 : i32
    %c0_i32_1 = arith.constant 0 : i32
    return %c0_i32, %c0_i32_0 : i32, i32
  }
  func.func @transform_6(%arg0: i32) -> (i32, i32) {
    %c0_i32 = arith.constant 0 : i32
    %c0_i32_0 = arith.constant 0 : i32
    %c0_i32_1 = arith.constant 0 : i32
    return %c0_i32, %c0_i32_0 : i32, i32
  }
  func.func @transform_7(%arg0: i32) -> (i32, i32) {
    %c0_i32 = arith.constant 0 : i32
    %c0_i32_0 = arith.constant 0 : i32
    %c0_i32_1 = arith.constant 0 : i32
    return %c0_i32, %c0_i32_0 : i32, i32
  }
  func.func @transform_8(%arg0: i32) -> (i32, i32) {
    %c0_i32 = arith.constant 0 : i32
    %c0_i32_0 = arith.constant 0 : i32
    %c0_i32_1 = arith.constant 0 : i32
    return %c0_i32, %c0_i32_0 : i32, i32
  }
  func.func @transform_9(%arg0: i32) -> i32 {
    %c0_i32 = arith.constant 0 : i32
    %c0_i32_0 = arith.constant 0 : i32
    return %c0_i32 : i32
  }
  func.func @transform_10(%arg0: i32) -> (i32, i32) {
    %c0_i32 = arith.constant 0 : i32
    %c0_i32_0 = arith.constant 0 : i32
    %c0_i32_1 = arith.constant 0 : i32
    return %c0_i32, %c0_i32_0 : i32, i32
  }
}

</mosaic_0001>

<bundles_post_ra>
// kernel: tpu_custom_call.1
= control target key start
LH: loop header
LB: loop body
LE: loop exit
PB: predicated region body
PF: predicated region fallthrough
CT: control target
= control target key end

     0   :  { %15 = vsyncpa [#allocation4], 0  ;;  %s2687_s0 = inlined_call_operand.hbm [shape: f32[16,32], index: 0, kind: input, shape index: {}]   ;;  %s2688_s1 = inlined_call_operand.vmem [shape: f32[32,96], index: 1, kind: input, shape index: {}]   ;;  %s2689_s2 = inlined_call_operand.vmem [shape: f32[1,96], index: 2, kind: input, shape index: {}]   ;;  %s2690_s3 = inlined_call_operand.vmem [shape: f32[32,32], index: 3, kind: input, shape index: {}]   ;;  %s2691_s4 = inlined_call_operand.vmem [shape: f32[1,32], index: 4, kind: input, shape index: {}]   ;;  %s2692_s5 = inlined_call_operand.vmem [shape: f32[32,64], index: 5, kind: input, shape index: {}]   ;;  %s2693_s6 = inlined_call_operand.vmem [shape: f32[1,64], index: 6, kind: input, shape index: {}]   ;;  %s2694_s7 = inlined_call_operand.vmem [shape: f32[64,32], index: 7, kind: input, shape index: {}]   ;;  %s2695_s8 = inlined_call_operand.vmem [shape: f32[1,32], index: 8, kind: input, shape index: {}]   ;;  %s2696_s9 = inlined_call_operand.vmem [shape: f32[4], index: 9, kind: input, shape index: {}]   ;;  %s2697_s10 = inlined_call_operand.hbm [shape: f32[16,32], index: 10, kind: output, shape index: {}]  }
   0x1   :  { %16 = vsyncpa [#allocation6], 0 }
   0x2   :  { %17 = vsyncpa [#allocation5], 0  ;;  %s2330_s13 = smov [#allocation3]   ;;  %s52_s17 = sshll.u32 %s2696_s9, 4  ;;  %s53_s17 = int_to_ptr.vmem [resolvable:$true] %s52_s17 }
   0x3   :  { %s23_s14 = sshll.u32 %s2330_s13, 4  ;;  %s2268_s20 = scalar_lea.hbm %s2687_s0, 256  ;;  %s24_s14 = int_to_ptr.vmem [resolvable:$true] %s23_s14 }
   0x4   :  { %p2269_p0 = scmp.ne.s32.totalorder %s2687_s0, %s2268_s20  ;;  %p2272_p1 = scmp.lt.u32.totalorder %s2268_s20, %s2687_s0 }
   0x6   :  { %p2274_p2 = pnand %p2272_p1, %p2269_p0 }
   0x8   :  { %2277 = shalt.err (!%p2274_p2)
}
   0x9   :  { %s2278_s25 = scalar_lea.vmem %s24_s14, 256  ;;  %p2283_p4 = scmp.lt.s32.totalorder %s24_s14, %s24_s14 }
   0xa   :  { %p2279_p3 = scmp.ne.s32.totalorder %s24_s14, %s2278_s25  ;;  %p2284_p5 = scmp.lt.s32.totalorder %s2278_s25, %s2278_s25 }
   0xc   :  { %p2285_p6 = por %p2284_p5, %p2283_p4 }
   0xe   :  { %p2286_p7 = pnand %p2285_p6, %p2279_p3 }
  0x10   :  { %2289 = shalt.err (!%p2286_p7)
}
  0x11   :  { %s2331_s9 = smov 128   ;;  %s2332_s26 = smov 8  }
  0x12   :  { %29 = dma.hbm_to_vmem [thread:$0]  %s2687_s0, 256, %s24_s14, [#allocation4], %s2331_s9, %s2331_s9, %s2332_s26  }
  0x13   :  { %s2290_s29 = scalar_lea.vmem %s53_s17, 16  ;;  %p2295_p9 = scmp.lt.s32.totalorder %s53_s17, %s53_s17 }
  0x14   :  { %p2291_p8 = scmp.ne.s32.totalorder %s53_s17, %s2290_s29  ;;  %p2296_p10 = scmp.lt.s32.totalorder %s2290_s29, %s2290_s29 }
  0x16   :  { %p2297_p11 = por %p2296_p10, %p2295_p9 }
  0x18   :  { %p2298_p12 = pnand %p2297_p11, %p2291_p8 }
  0x1a   :  { %2301 = shalt.err (!%p2298_p12)
}
  0x1b   :  { %s2333_s30 = smov [#allocation7]  }
  0x1c   :  { %55 = dma.vmem_to_smem %s53_s17, 16, %s2333_s30, [#allocation6]  }
  0x1d   :  { %2324 = dma.done.wait [#allocation4], 256  }
  0x1e   :  { %2325 = vsyncadd [#allocation4], 4294967040 }
  0x1f   :  { %2326 = dma.done.wait [#allocation6], 16  }
  0x20   :  { %2327 = vsyncadd [#allocation6], 4294967280 }
  0x21   :  { %62 = sfence }
  0x22   :  { %v2423_v0 = vld [vmem:[#allocation3] sm:$0xff]  ;;  %vm69_vm0 = vcmask 261120   ;;  %v2425_v1 = vld [vmem:[#allocation3 + $0x8] sm:$0xff]  ;;  %v118_v14 = vld [vmem:[%s2688_s1] sm:$0xff]  ;;  %s1929_s18 = sld [smem:[#allocation7 + $0x1]]  ;;  %v2334_v46 = vmov 0.0  }
  0x23   :  { %v70_v2 = vsel %vm69_vm0, %v2423_v0, 0.0  ;;  %v73_v3 = vsel %vm69_vm0, %v2425_v1, 0.0  ;;  %v119_v15 = vld [vmem:[%s2688_s1 + $0x8] sm:$0xff]  ;;  %v120_v16 = vld [vmem:[%s2688_s1 + $0x10] sm:$0xff]  ;;  %v121_v18 = vld [vmem:[%s2688_s1 + $0x18] sm:$0xff]  ;;  %s65_s1 = sld [smem:[#allocation7]]  ;;  %2049 = vmatprep.subr.mxu0 %v2334_v46 }
  0x24   :  { %71 = vadd.xlane.f32.xlu0 %v70_v2  ;;  %v2160_v17 = vpack.c.bf16 %v119_v15, %v118_v14  ;;  %v2164_v19 = vpack.c.bf16 %v121_v18, %v120_v16  ;;  %vm2335_vm5 = vmmov 0   ;;  %v1932_v47 = vld [vmem:[%s2689_s2] ss:$0 sm:$0xff]  ;;  %s2336_s21 = smov 96   ;;  %s2337_s22 = smov 88   ;;  %vm213_vm6 = vcmask 64512  }
  0x25   :  { %2051 = vmatprep.mubr.msk.f32.mxu0 %vm2335_vm5, %v2334_v46  ;;  %s2338_s23 = smov 120   ;;  %s2339_s2 = smov 72   ;;  %vm1086_vm7 = vcmask 130112   ;;  %vm1168_vm8 = vcmask 195712   ;;  %vm1250_vm9 = vcmask 261312   ;;  %vm1825_vm14 = vcmask 523264  }
  0x26   :  { %2161 = vmatprep.subr.bf16.mxu1 %v2160_v17  ;;  %s2340_s24 = smov 80   ;;  %s2341_s25 = smov 104  }
  0x27   :  { %2163 = vmatpush3.bf16.msra.mxu1 %v2160_v17  ;;  %s2342_s27 = smov 112   ;;  %s2343_s28 = smov 56  }
  0x28   :  { %74 = vadd.xlane.f32.xlu0 %v73_v3  ;;  %2165 = vmatprep.subr.bf16.mxu1 %v2164_v19  ;;  %v115_v39 = vstv %s1929_s18  ;;  %s2344_s29 = smov 48   ;;  %s2345_s30 = smov 64  }
  0x29   :  { %v92_v36 = vstv %s65_s1  ;;  %s2346_s0 = smov 40   ;;  %s2347_s15 = smov 16  }
  0x2a   :  { %s2348_s19 = smov 24   ;;  %s1930_s1 = sld [smem:[#allocation7 + $0x2]] }
  0x2b   :  { %2167 = vmatpush3.bf16.msra.mxu1 %v2164_v19  ;;  %s1931_s18 = sld [smem:[#allocation7 + $0x3]] }
  0x2c   :  { %2039 = vmatprep.subr.mxu1 %v2334_v46 }
  0xb1   :  { %v72_v4 = vpop.xlane.xlu0 %71 }
  0xb2   :  { %v77_v5 = vmul.f32 0.03125, %v72_v4 }
  0xb4   :  { %v79_v6 = vsub.f32 %v2423_v0, %v77_v5 }
  0xb5   :  { %v75_v7 = vpop.xlane.xlu0 %74 }
  0xb6   :  { %v78_v8 = vmul.f32 0.03125, %v75_v7  ;;  %v81_v9 = vmul.f32 %v79_v6, %v79_v6  ;;  %v93_v37 = vmul.f32 %v92_v36, %v79_v6 }
  0xb8   :  { %v80_v10 = vsub.f32 %v2425_v1, %v78_v8  ;;  %v83_v11 = vsel %vm69_vm0, %v81_v9, 0.0 }
  0xb9   :  { %84 = vadd.xlane.f32.xlu1 %v83_v11 }
  0xba   :  { %v82_v12 = vmul.f32 %v80_v10, %v80_v10  ;;  %v94_v41 = vmul.f32 %v92_v36, %v80_v10 }
  0xbc   :  { %v86_v13 = vsel %vm69_vm0, %v82_v12, 0.0 }
  0xbd   :  { %87 = vadd.xlane.f32.xlu1 %v86_v13 }
 0x146   :  { %v85_v20 = vpop.xlane.xlu1 %84 }
 0x147   :  { %v90_v21 = vmul.f32 0.032258064, %v85_v20 }
 0x149   :  { %2220 = vrsqrt.f32 %v90_v21  ;;  %vm97_vm1 = vcmp.eq.f32.partialorder %v90_v21, inf  ;;  %v100_v26 = vand.u32 2147483648, %v90_v21  ;;  %vm99_vm2 = vcmp.eq.f32.partialorder %v90_v21, 0.0 }
 0x14a   :  { %v88_v22 = vpop.xlane.xlu1 %87 }
 0x14b   :  { %v91_v23 = vmul.f32 0.032258064, %v88_v22 }
 0x14d   :  { %2222 = vrsqrt.f32 %v91_v23  ;;  %vm104_vm3 = vcmp.eq.f32.partialorder %v91_v23, inf  ;;  %v107_v32 = vand.u32 2147483648, %v91_v23  ;;  %vm106_vm4 = vcmp.eq.f32.partialorder %v91_v23, 0.0 }
 0x153   :  { %v2221_v24 = vpop.eup %2220 }
 0x154   :  { %v96_v25 = vmul.f32 %v2221_v24, %v90_v21 }
 0x156   :  { %v98_v27 = vsel %vm97_vm1, %v90_v21, %v96_v25 }
 0x157   :  { %v2223_v28 = vpop.eup %2222  ;;  %v101_v29 = vsel %vm99_vm2, %v100_v26, %v98_v27 }
 0x158   :  { %v103_v30 = vmul.f32 %v2223_v28, %v91_v23  ;;  %v109_v31 = vadd.f32 1e-06, %v101_v29 }
 0x15a   :  { %v105_v33 = vsel %vm104_vm3, %v91_v23, %v103_v30  ;;  %2224 = vrcp.f32 %v109_v31 }
 0x15b   :  { %v108_v34 = vsel %vm106_vm4, %v107_v32, %v105_v33 }
 0x15c   :  { %v110_v35 = vadd.f32 1e-06, %v108_v34 }
 0x15e   :  { %2226 = vrcp.f32 %v110_v35 }
 0x164   :  { %v2225_v38 = vpop.eup %2224 }
 0x165   :  { %v112_v40 = vmul.f32 %v2225_v38, %v93_v37 }
 0x167   :  { %v116_v42 = vadd.f32 %v115_v39, %v112_v40 }
 0x168   :  { %v2227_v43 = vpop.eup %2226 }
 0x169   :  { %v114_v44 = vmul.f32 %v2227_v43, %v94_v41  ;;  %2036 = vmatprep.mubr.msk.f32.mxu1 %vm69_vm0, %v116_v42 }
 0x16b   :  { %v117_v45 = vadd.f32 %v115_v39, %v114_v44 }
 0x16d   :  { %2037 = vmatmul.mubr.msk.f32.vlgmr.msra.gmra.mrb[0].mxu1 %vm69_vm0, %v117_v45 }
 0x16e   :  { %2041 = vmatprep.mubr.msk.f32.mxu1 %vm2335_vm5, %v2334_v46 }
 0x240   :  { %v2038_v48 = vpop.f32.mrb[0].mxu1 }
 0x241   :  { %v2458_v49 = vadd.f32 %v2038_v48, %v1932_v47  ;;  %v201_v50 = vpop.f32.mrb[1].mxu1 }
 0x242   :  { %v2460_v51 = vadd.f32 %v1932_v47, %v201_v50 }
 0x243   :  { %527 = vrot.lane.b32.xlu1 %v2458_v49, %s2336_s21 }
 0x244   :  { %211 = vrot.lane.b32.xlu0 %v2460_v51, %s2336_s21 }
 0x247   :  { %291 = vrot.lane.b32.xlu1 %v2460_v51, %s2337_s22 }
 0x248   :  { %606 = vrot.lane.b32.xlu0 %v2458_v49, %s2337_s22 }
 0x24b   :  { %289 = vrot.lane.b32.xlu1 %v2460_v51, %s2338_s23 }
 0x24c   :  { %449 = vrot.lane.b32.xlu0 %v2460_v51, %s2339_s2 }
 0x24f   :  { %370 = vrot.lane.b32.xlu1 %v2460_v51, %s2340_s24 }
 0x250   :  { %447 = vrot.lane.b32.xlu0 %v2460_v51, %s2341_s25 }
 0x253   :  { %368 = vrot.lane.b32.xlu1 %v2460_v51, %s2342_s27 }
 0x254   :  { %685 = vrot.lane.b32.xlu0 %v2458_v49, %s2340_s24 }
 0x257   :  { %604 = vrot.lane.b32.xlu1 %v2458_v49, %s2338_s23 }
 0x258   :  { %683 = vrot.lane.b32.xlu0 %v2458_v49, %s2342_s27 }
 0x25b   :  { %764 = vrot.lane.b32.xlu1 %v2458_v49, %s2339_s2 }
 0x25f   :  { %762 = vrot.lane.b32.xlu1 %v2458_v49, %s2341_s25 }
 0x2b5   :  { %v528_v52 = vpop.permute.xlu1 %527 }
 0x2b6   :  { %v212_v53 = vpop.permute.xlu0 %211 }
 0x2b7   :  { %2040 = vmatpush3.xpose.msk.msra.mxu1 %vm213_vm6, %v212_v53 }
 0x2b8   :  { %2044 = vmatprep.subr.mxu1 %v2334_v46 }
 0x2b9   :  { %v292_v54 = vpop.permute.xlu1 %291 }
 0x2ba   :  { %2042 = vmatmul.mubr.msk.f32.vlgmr.msra.gmra.mrb[2].mxu1 %vm213_vm6, %v2460_v51  ;;  %v607_v55 = vpop.permute.xlu0 %606 }
 0x2bb   :  { %2045 = vmatpush3.xpose.msk.msra.mxu1 %vm213_vm6, %v292_v54  ;;  %2046 = vmatprep.mubr.msk.f32.mxu1 %vm2335_vm5, %v2334_v46 }
 0x2bc   :  { %2054 = vmatprep.subr.mxu1 %v2334_v46 }
 0x2bd   :  { %v290_v56 = vpop.permute.xlu1 %289 }
 0x2be   :  { %2047 = vmatmul.mubr.msk.f32.vlgmr.msra.gmra.mrb[4].mxu1 %vm213_vm6, %v290_v56  ;;  %v450_v57 = vpop.permute.xlu0 %449 }
 0x2bf   :  { %2055 = vmatpush3.xpose.msk.msra.mxu1 %vm213_vm6, %v450_v57  ;;  %2056 = vmatprep.mubr.msk.f32.mxu1 %vm2335_vm5, %v2334_v46 }
 0x2c0   :  { %2064 = vmatprep.subr.mxu1 %v2334_v46 }
 0x2c1   :  { %v371_v58 = vpop.permute.xlu1 %370 }
 0x2c2   :  { %2050 = vmatpush3.xpose.msk.msra.mxu0 %vm213_vm6, %v371_v58  ;;  %v448_v59 = vpop.permute.xlu0 %447 }
 0x2c3   :  { %2057 = vmatmul.mubr.msk.f32.vlgmr.msra.gmra.mrb[6].mxu1 %vm213_vm6, %v448_v59  ;;  %2059 = vmatprep.subr.mxu0 %v2334_v46 }
 0x2c4   :  { %2065 = vmatpush3.xpose.msk.msra.mxu1 %vm213_vm6, %v607_v55  ;;  %2066 = vmatprep.mubr.msk.f32.mxu1 %vm2335_vm5, %v2334_v46 }
 0x2c5   :  { %v369_v60 = vpop.permute.xlu1 %368  ;;  %2074 = vmatprep.subr.mxu1 %v2334_v46 }
 0x2c6   :  { %2052 = vmatmul.mubr.msk.f32.vlgmr.msra.gmra.mrb[0].mxu0 %vm213_vm6, %v369_v60  ;;  %v686_v61 = vpop.permute.xlu0 %685 }
 0x2c7   :  { %2060 = vmatpush3.xpose.msk.msra.mxu0 %vm213_vm6, %v528_v52  ;;  %2061 = vmatprep.mubr.msk.f32.mxu0 %vm2335_vm5, %v2334_v46 }
 0x2c8   :  { %2069 = vmatprep.subr.mxu0 %v2334_v46 }
 0x2c9   :  { %v605_v62 = vpop.permute.xlu1 %604 }
 0x2ca   :  { %2062 = vmatmul.mubr.msk.f32.vlgmr.msra.gmra.mrb[2].mxu0 %vm213_vm6, %v2458_v49  ;;  %2067 = vmatmul.mubr.msk.f32.vlgmr.msra.gmra.mrb[8].mxu1 %vm213_vm6, %v605_v62  ;;  %v684_v63 = vpop.permute.xlu0 %683 }
 0x2cb   :  { %2070 = vmatpush3.xpose.msk.msra.mxu0 %vm213_vm6, %v686_v61  ;;  %2071 = vmatprep.mubr.msk.f32.mxu0 %vm2335_vm5, %v2334_v46 }
 0x2cc   :  { %2076 = vmatprep.mubr.msk.f32.mxu1 %vm2335_vm5, %v2334_v46  ;;  %2079 = vmatprep.subr.mxu0 %v2334_v46 }
 0x2cd   :  { %v765_v2 = vpop.permute.xlu1 %764 }
 0x2ce   :  { %2072 = vmatmul.mubr.msk.f32.vlgmr.msra.gmra.mrb[4].mxu0 %vm213_vm6, %v684_v63  ;;  %2075 = vmatpush3.xpose.msk.msra.mxu1 %vm213_vm6, %v765_v2 }
 0x2cf   :  { %2084 = vmatprep.subr.mxu1 %v2334_v46  ;;  %2081 = vmatprep.mubr.msk.f32.mxu0 %vm2335_vm5, %v2334_v46 }
 0x2d1   :  { %v763_v3 = vpop.permute.xlu1 %762 }
 0x2d2   :  { %2077 = vmatmul.mubr.msk.f32.vlgmr.msra.gmra.mrb[10].mxu1 %vm213_vm6, %v763_v3 }
 0x2d3   :  { %2086 = vmatprep.mubr.msk.f32.mxu1 %vm2335_vm5, %v2334_v46 }
 0x38d   :  { %v284_v4 = vpop.f32.mrb[2].mxu1 }
 0x38e   :  { %v288_v5 = vmul.f32 0.35355338, %v284_v4  ;;  %v2043_v6 = vpop.f32.mrb[3].mxu1 }
 0x390   :  { %v841_v7 = vsel %vm213_vm6, %v288_v5, -inf }
 0x391   :  { %842 = vmax.xlane.f32.xlu0 %v841_v7  ;;  %v363_v8 = vpop.f32.mrb[4].mxu1 }
 0x392   :  { %v367_v9 = vmul.f32 0.35355338, %v363_v8  ;;  %v2048_v10 = vpop.f32.mrb[5].mxu1 }
 0x394   :  { %v844_v11 = vsel %vm213_vm6, %v367_v9, -inf }
 0x395   :  { %845 = vmax.xlane.f32.xlu1 %v844_v11 }
 0x396   :  { %v521_v12 = vpop.f32.mrb[6].mxu1 }
 0x397   :  { %v2058_v13 = vpop.f32.mrb[7].mxu1  ;;  %v525_v17 = vmul.f32 0.35355338, %v521_v12 }
 0x399   :  { %v442_v14 = vpop.f32.mrb[0].mxu0  ;;  %v850_v25 = vsel %vm213_vm6, %v525_v17, -inf }
 0x39a   :  { %v446_v15 = vmul.f32 0.35355338, %v442_v14  ;;  %v2053_v16 = vpop.f32.mrb[1].mxu0 }
 0x39c   :  { %v847_v18 = vsel %vm213_vm6, %v446_v15, -inf }
 0x39d   :  { %v599_v19 = vpop.f32.mrb[2].mxu0  ;;  %848 = vmax.xlane.f32.xlu0 %v847_v18  ;;  %v678_v20 = vpop.f32.mrb[8].mxu1 }
 0x39e   :  { %v682_v21 = vmul.f32 0.35355338, %v678_v20  ;;  %v2063_v22 = vpop.f32.mrb[3].mxu0  ;;  %v2068_v23 = vpop.f32.mrb[9].mxu1  ;;  %v603_v24 = vmul.f32 0.35355338, %v599_v19 }
 0x3a0   :  { %v856_v26 = vsel %vm213_vm6, %v682_v21, -inf  ;;  %v853_v30 = vsel %vm213_vm6, %v603_v24, -inf }
 0x3a1   :  { %851 = vmax.xlane.f32.xlu0 %v850_v25  ;;  %857 = vmax.xlane.f32.xlu1 %v856_v26  ;;  %v757_v27 = vpop.f32.mrb[4].mxu0 }
 0x3a2   :  { %v2073_v28 = vpop.f32.mrb[5].mxu0  ;;  %v761_v29 = vmul.f32 0.35355338, %v757_v27 }
 0x3a4   :  { %v859_v35 = vsel %vm213_vm6, %v761_v29, -inf }
 0x3a5   :  { %854 = vmax.xlane.f32.xlu0 %v853_v30  ;;  %v836_v31 = vpop.f32.mrb[10].mxu1 }
 0x3a6   :  { %v840_v32 = vmul.f32 0.35355338, %v836_v31  ;;  %v2078_v33 = vpop.f32.mrb[11].mxu1 }
 0x3a8   :  { %v862_v34 = vsel %vm213_vm6, %v840_v32, -inf }
 0x3a9   :  { %863 = vmax.xlane.f32.xlu1 %v862_v34  ;;  %860 = vmax.xlane.f32.xlu0 %v859_v35 }
 0x3ba   :  { %1006 = vrot.lane.b32.xlu1 %v2460_v51, %s2343_s28 }
 0x3be   :  { %1088 = vrot.lane.b32.xlu1 %v2460_v51, %s2344_s29 }
 0x3bf   :  { %929 = vrot.lane.b32.xlu0 %v2460_v51, %s2345_s30 }
 0x3c2   :  { %1170 = vrot.lane.b32.xlu1 %v2460_v51, %s2346_s0 }
 0x3c3   :  { %1252 = vrot.lane.b32.xlu0 %v2458_v49, %s2345_s30 }
 0x3c6   :  { %1329 = vrot.lane.b32.xlu1 %v2458_v49, %s2343_s28 }
 0x41e   :  { %v843_v36 = vpop.xlane.xlu0 %842 }
 0x41f   :  { %v865_v37 = vsub.f32 %v288_v5, %v843_v36 }
 0x421   :  { %v873_v38 = vmul.f32 1.442695, %v865_v37 }
 0x422   :  { %v846_v39 = vpop.xlane.xlu1 %845 }
 0x423   :  { %2228 = vpow2.f32 %v873_v38  ;;  %v866_v40 = vsub.f32 %v367_v9, %v846_v39 }
 0x425   :  { %v875_v41 = vmul.f32 1.442695, %v866_v40 }
 0x427   :  { %2230 = vpow2.f32 %v875_v41 }
 0x42a   :  { %v849_v42 = vpop.xlane.xlu0 %848 }
 0x42b   :  { %v867_v43 = vsub.f32 %v446_v15, %v849_v42 }
 0x42d   :  { %v2534_v44 = vpop.eup %2228  ;;  %v877_v45 = vmul.f32 1.442695, %v867_v43 }
 0x42e   :  { %v858_v47 = vpop.xlane.xlu1 %857  ;;  %v852_v48 = vpop.xlane.xlu0 %851  ;;  %v889_v50 = vsel %vm213_vm6, %v2534_v44, 0.0 }
 0x42f   :  { %2232 = vpow2.f32 %v877_v45  ;;  %v870_v51 = vsub.f32 %v682_v21, %v858_v47  ;;  %v868_v52 = vsub.f32 %v525_v17, %v852_v48  ;;  %890 = vadd.xlane.f32.xlu0 %v889_v50 }
 0x431   :  { %v2231_v53 = vpop.eup %2230  ;;  %v879_v54 = vmul.f32 1.442695, %v868_v52  ;;  %v883_v55 = vmul.f32 1.442695, %v870_v51 }
 0x432   :  { %v855_v56 = vpop.xlane.xlu0 %854  ;;  %v892_v57 = vsel %vm213_vm6, %v2231_v53, 0.0 }
 0x433   :  { %v869_v58 = vsub.f32 %v603_v24, %v855_v56  ;;  %893 = vadd.xlane.f32.xlu1 %v892_v57  ;;  %2234 = vpow2.f32 %v879_v54  ;;  %v1574_v54 = vld [vmem:[%s2690_s3] sm:$0xff]  ;;  %v1576_v57 = vld [vmem:[%s2690_s3 + $0x10] sm:$0xff] }
 0x434   :  { %2236 = vpow2.f32 %v883_v55 }
 0x435   :  { %v881_v59 = vmul.f32 1.442695, %v869_v58  ;;  %v1577_v58 = vld [vmem:[%s2690_s3 + $0x18] sm:$0xff] }
 0x436   :  { %v864_v60 = vpop.xlane.xlu1 %863  ;;  %v861_v61 = vpop.xlane.xlu0 %860 }
 0x437   :  { %2238 = vpow2.f32 %v881_v59  ;;  %v872_v62 = vsub.f32 %v840_v32, %v864_v60  ;;  %v871_v63 = vsub.f32 %v761_v29, %v861_v61  ;;  %v2172_v59 = vpack.c.bf16 %v1577_v58, %v1576_v57 }
 0x439   :  { %v2233_v2 = vpop.eup %2232  ;;  %v887_v3 = vmul.f32 1.442695, %v872_v62  ;;  %v885_v4 = vmul.f32 1.442695, %v871_v63 }
 0x43a   :  { %v1007_v5 = vpop.permute.xlu1 %1006  ;;  %v930_v6 = vpop.permute.xlu0 %929  ;;  %v895_v7 = vsel %vm213_vm6, %v2233_v2, 0.0 }
 0x43b   :  { %2240 = vpow2.f32 %v887_v3  ;;  %2085 = vmatpush3.msra.mxu1 %v1007_v5  ;;  %896 = vadd.xlane.f32.xlu0 %v895_v7 }
 0x43c   :  { %2242 = vpow2.f32 %v885_v4  ;;  %2080 = vmatpush3.msra.mxu0 %v930_v6  ;;  %2094 = vmatprep.subr.mxu1 %v2334_v46 }
 0x43d   :  { %2089 = vmatprep.subr.mxu0 %v2334_v46  ;;  %v2235_v8 = vpop.eup %2234 }
 0x43e   :  { %v898_v9 = vsel %vm213_vm6, %v2235_v8, 0.0  ;;  %v2237_v10 = vpop.eup %2236  ;;  %v1089_v18 = vpop.permute.xlu1 %1088 }
 0x43f   :  { %899 = vadd.xlane.f32.xlu1 %v898_v9  ;;  %v904_v13 = vsel %vm213_vm6, %v2237_v10, 0.0  ;;  %v1253_v20 = vpop.permute.xlu0 %1252 }
 0x441   :  { %v2239_v11 = vpop.eup %2238 }
 0x442   :  { %v901_v12 = vsel %vm213_vm6, %v2239_v11, 0.0  ;;  %v1171_v19 = vpop.permute.xlu1 %1170 }
 0x443   :  { %902 = vadd.xlane.f32.xlu0 %v901_v12  ;;  %905 = vadd.xlane.f32.xlu1 %v904_v13 }
 0x445   :  { %v2545_v14 = vpop.eup %2240 }
 0x446   :  { %v2547_v15 = vpop.eup %2242  ;;  %v910_v16 = vsel %vm213_vm6, %v2545_v14, 0.0  ;;  %v1330_v21 = vpop.permute.xlu1 %1329 }
 0x447   :  { %v907_v17 = vsel %vm213_vm6, %v2547_v15, 0.0  ;;  %911 = vadd.xlane.f32.xlu1 %v910_v16 }
 0x448   :  { %908 = vadd.xlane.f32.xlu0 %v907_v17  ;;  %v1961_v17 = vld [vmem:[%s2691_s4] ss:$0 sm:$0xff] }
 0x458   :  { %1491 = vrot.lane.b32.xlu1 %v2458_v49, %s2346_s0 }
 0x45e   :  { %1410 = vrot.lane.b32.xlu0 %v2458_v49, %s2344_s29 }
 0x4bc   :  { %v891_v22 = vpop.xlane.xlu0 %890 }
 0x4bd   :  { %2244 = vrcp.f32 %v891_v22 }
 0x4c0   :  { %v894_v23 = vpop.xlane.xlu1 %893 }
 0x4c1   :  { %2246 = vrcp.f32 %v894_v23 }
 0x4c7   :  { %v2245_v24 = vpop.eup %2244 }
 0x4c8   :  { %v914_v25 = vmul.f32 %v2245_v24, %v2534_v44  ;;  %v897_v26 = vpop.xlane.xlu0 %896 }
 0x4c9   :  { %2248 = vrcp.f32 %v897_v26 }
 0x4ca   :  { %2082 = vmatmul.mubr.msk.f32.vlgmr.msra.gmra.mrb[6].mxu0 %vm213_vm6, %v914_v25 }
 0x4cb   :  { %v2247_v27 = vpop.eup %2246  ;;  %2090 = vmatpush3.msra.mxu0 %v1089_v18  ;;  %2091 = vmatprep.mubr.msk.f32.mxu0 %vm2335_vm5, %v2334_v46 }
 0x4cc   :  { %v916_v49 = vmul.f32 %v2247_v27, %v2231_v53  ;;  %2099 = vmatprep.subr.mxu0 %v2334_v46  ;;  %v900_v28 = vpop.xlane.xlu1 %899 }
 0x4cd   :  { %2250 = vrcp.f32 %v900_v28 }
 0x4ce   :  { %2087 = vmatmul.mubr.msk.f32.vlgmr.msra.gmra.mrb[12].mxu1 %vm213_vm6, %v916_v49 }
 0x4cf   :  { %2095 = vmatpush3.msra.mxu1 %v1171_v19  ;;  %2096 = vmatprep.mubr.msk.f32.mxu1 %vm2335_vm5, %v2334_v46 }
 0x4d0   :  { %v903_v29 = vpop.xlane.xlu0 %902  ;;  %2104 = vmatprep.subr.mxu1 %v2334_v46  ;;  %v906_v30 = vpop.xlane.xlu1 %905 }
 0x4d1   :  { %2252 = vrcp.f32 %v903_v29 }
 0x4d2   :  { %2254 = vrcp.f32 %v906_v30 }
 0x4d3   :  { %v2249_v31 = vpop.eup %2248 }
 0x4d4   :  { %v918_v32 = vmul.f32 %v2249_v31, %v2233_v2  ;;  %v912_v33 = vpop.xlane.xlu1 %911 }
 0x4d5   :  { %v909_v34 = vpop.xlane.xlu0 %908  ;;  %2256 = vrcp.f32 %v912_v33  ;;  %v1717_v33 = vld [vmem:[%s2692_s5 + $0x8] sm:$0xff] }
 0x4d6   :  { %2092 = vmatmul.mubr.msk.f32.vlgmr.msra.gmra.mrb[8].mxu0 %vm213_vm6, %v918_v32  ;;  %2258 = vrcp.f32 %v909_v34  ;;  %v1716_v32 = vld [vmem:[%s2692_s5] sm:$0xff]  ;;  %v1718_v34 = vld [vmem:[%s2692_s5 + $0x10] sm:$0xff] }
 0x4d7   :  { %2100 = vmatpush3.msra.mxu0 %v1253_v20  ;;  %2101 = vmatprep.mubr.msk.f32.mxu0 %vm2335_vm5, %v2334_v46  ;;  %v2251_v35 = vpop.eup %2250 }
 0x4d8   :  { %2109 = vmatprep.subr.mxu0 %v2334_v46  ;;  %v920_v36 = vmul.f32 %v2251_v35, %v2235_v8  ;;  %v1492_v42 = vpop.permute.xlu1 %1491  ;;  %v2176_v35 = vpack.c.bf16 %v1717_v33, %v1716_v32 }
 0x4d9   :  { %v1411_v41 = vpop.permute.xlu0 %1410 }
 0x4da   :  { %2097 = vmatmul.mubr.msk.f32.vlgmr.msra.gmra.mrb[14].mxu1 %vm213_vm6, %v920_v36  ;;  %v1719_v36 = vld [vmem:[%s2692_s5 + $0x18] sm:$0xff] }
 0x4db   :  { %v2253_v37 = vpop.eup %2252  ;;  %2105 = vmatpush3.msra.mxu1 %v1330_v21  ;;  %2106 = vmatprep.mubr.msk.f32.mxu1 %vm2335_vm5, %v2334_v46 }
 0x4dc   :  { %v2255_v38 = vpop.eup %2254  ;;  %v922_v39 = vmul.f32 %v2253_v37, %v2239_v11  ;;  %2114 = vmatprep.subr.mxu1 %v2334_v46  ;;  %v2180_v37 = vpack.c.bf16 %v1719_v36, %v1718_v34 }
 0x4dd   :  { %v924_v40 = vmul.f32 %v2255_v38, %v2237_v10  ;;  %v1810_v38 = vld [vmem:[%s2694_s7] sm:$0xff] }
 0x4de   :  { %2102 = vmatmul.mubr.msk.f32.vlgmr.msra.gmra.mrb[10].mxu0 %vm213_vm6, %v922_v39  ;;  %v1811_v39 = vld [vmem:[%s2694_s7 + $0x8] sm:$0xff] }
 0x4df   :  { %2107 = vmatmul.mubr.msk.f32.vlgmr.msra.gmra.mrb[16].mxu1 %vm213_vm6, %v924_v40  ;;  %2110 = vmatpush3.msra.mxu0 %v1411_v41  ;;  %v2257_v43 = vpop.eup %2256  ;;  %v1812_v40 = vld [vmem:[%s2694_s7 + $0x10] sm:$0xff]  ;;  %v2184_v41 = vpack.c.bf16 %v1811_v39, %v1810_v38 }
 0x4e0   :  { %2115 = vmatpush3.msra.mxu1 %v1492_v42  ;;  %2111 = vmatprep.mubr.msk.f32.mxu0 %vm2335_vm5, %v2334_v46  ;;  %v2259_v44 = vpop.eup %2258  ;;  %v928_v45 = vmul.f32 %v2257_v43, %v2545_v14  ;;  %v1813_v42 = vld [vmem:[%s2694_s7 + $0x18] sm:$0xff] }
 0x4e1   :  { %2116 = vmatprep.mubr.msk.f32.mxu1 %vm2335_vm5, %v2334_v46  ;;  %v926_v47 = vmul.f32 %v2259_v44, %v2547_v15  ;;  %v1575_v46 = vld [vmem:[%s2690_s3 + $0x8] sm:$0xff]  ;;  %2177 = vmatprep.subr.bf16.mxu1 %v2176_v35  ;;  %v2188_v43 = vpack.c.bf16 %v1813_v42, %v1812_v40  ;;  %v1814_v44 = vld [vmem:[%s2694_s7 + $0x20] sm:$0xff] }
 0x4e2   :  { %v2168_v56 = vpack.c.bf16 %v1575_v46, %v1574_v54 }
 0x4e3   :  { %2117 = vmatmul.mubr.msk.f32.vlgmr.msra.gmra.mrb[18].mxu1 %vm213_vm6, %v928_v45  ;;  %2112 = vmatmul.mubr.msk.f32.vlgmr.msra.gmra.mrb[12].mxu0 %vm213_vm6, %v926_v47  ;;  %v1815_v45 = vld [vmem:[%s2694_s7 + $0x28] sm:$0xff] }
 0x4e4   :  { %2169 = vmatprep.subr.bf16.mxu0 %v2168_v56  ;;  %2179 = vmatpush3.bf16.msra.mxu1 %v2176_v35  ;;  %v2192_v47 = vpack.c.bf16 %v1815_v45, %v1814_v44 }
 0x4e5   :  { %2171 = vmatpush3.bf16.msra.mxu0 %v2168_v56  ;;  %2181 = vmatprep.subr.bf16.mxu1 %v2180_v37 }
 0x4e6   :  { %2173 = vmatprep.subr.bf16.mxu0 %v2172_v59 }
 0x4e8   :  { %2183 = vmatpush3.bf16.msra.mxu1 %v2180_v37 }
 0x4e9   :  { %2175 = vmatpush3.bf16.msra.mxu0 %v2172_v59 }
 0x4ea   :  { %2185 = vmatprep.subr.bf16.mxu0 %v2184_v41 }
 0x59d   :  { %v1001_v48 = vpop.f32.mrb[6].mxu0 }
 0x59e   :  { %1005 = vst.msk [vmem:[#allocation2] sm:$0xff] %vm213_vm6, %v1001_v48  ;;  %v2083_v50 = vpop.f32.mrb[7].mxu0 }
 0x5a1   :  { %v1078_v51 = vpop.f32.mrb[12].mxu1 }
 0x5a2   :  { %v2088_v52 = vpop.f32.mrb[13].mxu1  ;;  %1083 = vrot.lane.b32.xlu0 %v1078_v51, %s2332_s26 }
 0x5a9   :  { %v1160_v53 = vpop.f32.mrb[8].mxu0 }
 0x5aa   :  { %1165 = vrot.lane.b32.xlu1 %v1160_v53, %s2347_s15  ;;  %v2093_v55 = vpop.f32.mrb[9].mxu0 }
 0x5ad   :  { %v1242_v60 = vpop.f32.mrb[14].mxu1 }
 0x5ae   :  { %v2098_v61 = vpop.f32.mrb[15].mxu1  ;;  %1247 = vrot.lane.b32.xlu1 %v1242_v60, %s2348_s19 }
 0x5b1   :  { %v1324_v62 = vpop.f32.mrb[10].mxu0 }
 0x5b2   :  { %1328 = vst.msk [vmem:[#allocation2 + $0x8] sm:$0xff] %vm213_vm6, %v1324_v62  ;;  %v1401_v63 = vpop.f32.mrb[16].mxu1  ;;  %v2103_v2 = vpop.f32.mrb[11].mxu0 }
 0x5b3   :  { %v2108_v3 = vpop.f32.mrb[17].mxu1  ;;  %1406 = vrot.lane.b32.xlu0 %v1401_v63, %s2332_s26  ;;  %v1690_v2 = vstv %s1930_s1 }
 0x5b6   :  { %v1563_v4 = vpop.f32.mrb[18].mxu1  ;;  %v1482_v5 = vpop.f32.mrb[12].mxu0 }
 0x5b7   :  { %v2118_v6 = vpop.f32.mrb[19].mxu1  ;;  %1568 = vrot.lane.b32.xlu1 %v1563_v4, %s2348_s19  ;;  %1487 = vrot.lane.b32.xlu0 %v1482_v5, %s2347_s15  ;;  %v2113_v7 = vpop.f32.mrb[13].mxu0  ;;  %v1713_v5 = vstv %s1931_s18 }
 0x614   :  { %v1084_v8 = vpop.permute.xlu0 %1083 }
 0x615   :  { %1087 = vst.msk [vmem:[#allocation2] sm:$0xff] %vm1086_vm7, %v1084_v8 }
 0x61c   :  { %v1166_v9 = vpop.permute.xlu1 %1165 }
 0x61d   :  { %1169 = vst.msk [vmem:[#allocation2] sm:$0xff] %vm1168_vm8, %v1166_v9 }
 0x620   :  { %v1248_v10 = vpop.permute.xlu1 %1247 }
 0x621   :  { %1251 = vst.msk [vmem:[#allocation2] sm:$0xff] %vm1250_vm9, %v1248_v10 }
 0x625   :  { %v1407_v11 = vpop.permute.xlu0 %1406 }
 0x626   :  { %1409 = vst.msk [vmem:[#allocation2 + $0x8] sm:$0xff] %vm1086_vm7, %v1407_v11 }
 0x628   :  { %v1572_v13 = vld [vmem:[#allocation2] sm:$0xff] }
 0x629   :  { %v1569_v12 = vpop.permute.xlu1 %1568  ;;  %v1488_v14 = vpop.permute.xlu0 %1487  ;;  %2127 = vmatprep.mubr.msk.f32.mxu0 %vm69_vm0, %v1572_v13  ;;  %v1817_v13 = vld [vmem:[%s2694_s7 + $0x38] sm:$0xff] }
 0x62a   :  { %1490 = vst.msk [vmem:[#allocation2 + $0x8] sm:$0xff] %vm1168_vm8, %v1488_v14 }
 0x62b   :  { %1571 = vst.msk [vmem:[#allocation2 + $0x8] sm:$0xff] %vm1250_vm9, %v1569_v12  ;;  %v1816_v12 = vld [vmem:[%s2694_s7 + $0x30] sm:$0xff]  ;;  %s2349_s7 = smov [#allocation8]  }
 0x62c   :  { %v2196_v14 = vpack.c.bf16 %v1817_v13, %v1816_v12  ;;  %s1916_s24 = sshll.u32 %s2349_s7, 4  ;;  %s1917_s24 = int_to_ptr.vmem [resolvable:$true] %s1916_s24 }
 0x62d   :  { %p2307_p0 = scmp.lt.s32.totalorder %s1917_s24, %s1917_s24 }
 0x632   :  { %v1573_v15 = vld [vmem:[#allocation2 + $0x8] sm:$0xff] }
 0x633   :  { %2128 = vmatmul.mubr.msk.f32.vlgmr.msra.gmra.mrb[14].mxu0 %vm69_vm0, %v1573_v15  ;;  %v1962_v15 = vld [vmem:[%s2693_s6] ss:$0 sm:$0xff]  ;;  %s2302_s6 = scalar_lea.vmem %s1917_s24, 256 }
 0x634   :  { %2187 = vmatpush3.bf16.msra.mxu0 %v2184_v41  ;;  %p2303_p13 = scmp.ne.s32.totalorder %s1917_s24, %s2302_s6  ;;  %p2308_p1 = scmp.lt.s32.totalorder %s2302_s6, %s2302_s6 }
 0x635   :  { %2189 = vmatprep.subr.bf16.mxu0 %v2188_v43 }
 0x636   :  { %p2309_p2 = por %p2308_p1, %p2307_p0 }
 0x638   :  { %2191 = vmatpush3.bf16.msra.mxu0 %v2188_v43  ;;  %p2310_p3 = pnand %p2309_p2, %p2303_p13 }
 0x639   :  { %2193 = vmatprep.subr.bf16.mxu0 %v2192_v47 }
 0x63c   :  { %2195 = vmatpush3.bf16.msra.mxu0 %v2192_v47 }
 0x63d   :  { %2197 = vmatprep.subr.bf16.mxu0 %v2196_v14 }
 0x640   :  { %2199 = vmatpush3.bf16.msra.mxu0 %v2196_v14 }
 0x706   :  { %v2129_v16 = vpop.f32.mrb[14].mxu0 }
 0x707   :  { %v1660_v18 = vadd.f32 %v2129_v16, %v2425_v1  ;;  %v1650_v19 = vpop.f32.mrb[15].mxu0 }
 0x708   :  { %v1659_v20 = vadd.f32 %v1650_v19, %v2423_v0 }
 0x709   :  { %v2607_v21 = vadd.f32 %v1961_v17, %v1660_v18 }
 0x70a   :  { %v2609_v22 = vadd.f32 %v1961_v17, %v1659_v20 }
 0x70b   :  { %v1673_v23 = vsel %vm69_vm0, %v2607_v21, 0.0 }
 0x70c   :  { %1674 = vadd.xlane.f32.xlu1 %v1673_v23  ;;  %v1670_v24 = vsel %vm69_vm0, %v2609_v22, 0.0 }
 0x70d   :  { %1671 = vadd.xlane.f32.xlu0 %v1670_v24  ;;  %v1965_v24 = vld [vmem:[%s2695_s8] ss:$0 sm:$0xff] }
 0x799   :  { %v1675_v25 = vpop.xlane.xlu1 %1674 }
 0x79a   :  { %v1677_v26 = vmul.f32 0.03125, %v1675_v25  ;;  %v1672_v27 = vpop.xlane.xlu0 %1671 }
 0x79b   :  { %v1676_v49 = vmul.f32 0.03125, %v1672_v27 }
 0x79c   :  { %v2616_v1 = vsub.f32 %v2607_v21, %v1677_v26 }
 0x79d   :  { %v1678_v0 = vsub.f32 %v2609_v22, %v1676_v49 }
 0x79e   :  { %v1681_v30 = vmul.f32 %v2616_v1, %v2616_v1  ;;  %v1692_v7 = vmul.f32 %v1690_v2, %v2616_v1 }
 0x79f   :  { %v1680_v28 = vmul.f32 %v1678_v0, %v1678_v0  ;;  %v1691_v3 = vmul.f32 %v1690_v2, %v1678_v0 }
 0x7a0   :  { %v1685_v31 = vsel %vm69_vm0, %v1681_v30, 0.0 }
 0x7a1   :  { %v1682_v29 = vsel %vm69_vm0, %v1680_v28, 0.0 }
 0x7a2   :  { %1683 = vadd.xlane.f32.xlu0 %v1682_v29 }
 0x7a6   :  { %1686 = vadd.xlane.f32.xlu0 %v1685_v31 }
 0x82f   :  { %v1684_v48 = vpop.xlane.xlu0 %1683 }
 0x830   :  { %v1688_v50 = vmul.f32 0.032258064, %v1684_v48 }
 0x832   :  { %2260 = vrsqrt.f32 %v1688_v50  ;;  %vm1695_vm10 = vcmp.eq.f32.partialorder %v1688_v50, inf  ;;  %v1698_v46 = vand.u32 2147483648, %v1688_v50  ;;  %vm1697_vm11 = vcmp.eq.f32.partialorder %v1688_v50, 0.0 }
 0x833   :  { %v1687_v51 = vpop.xlane.xlu0 %1686 }
 0x834   :  { %v1689_v52 = vmul.f32 0.032258064, %v1687_v51 }
 0x836   :  { %2262 = vrsqrt.f32 %v1689_v52  ;;  %vm1702_vm12 = vcmp.eq.f32.partialorder %v1689_v52, inf  ;;  %v1705_v60 = vand.u32 2147483648, %v1689_v52  ;;  %vm1704_vm13 = vcmp.eq.f32.partialorder %v1689_v52, 0.0 }
 0x83c   :  { %v2261_v53 = vpop.eup %2260 }
 0x83d   :  { %v1694_v54 = vmul.f32 %v2261_v53, %v1688_v50 }
 0x83f   :  { %v1696_v55 = vsel %vm1695_vm10, %v1688_v50, %v1694_v54 }
 0x840   :  { %v2263_v56 = vpop.eup %2262  ;;  %v1699_v57 = vsel %vm1697_vm11, %v1698_v46, %v1696_v55 }
 0x841   :  { %v1701_v58 = vmul.f32 %v2263_v56, %v1689_v52  ;;  %v1707_v59 = vadd.f32 1e-06, %v1699_v57 }
 0x843   :  { %v1703_v61 = vsel %vm1702_vm12, %v1689_v52, %v1701_v58  ;;  %2264 = vrcp.f32 %v1707_v59 }
 0x844   :  { %v1706_v62 = vsel %vm1704_vm13, %v1705_v60, %v1703_v61 }
 0x845   :  { %v1708_v63 = vadd.f32 1e-06, %v1706_v62 }
 0x847   :  { %2266 = vrcp.f32 %v1708_v63 }
 0x84d   :  { %v2265_v4 = vpop.eup %2264 }
 0x84e   :  { %v1710_v6 = vmul.f32 %v2265_v4, %v1691_v3 }
 0x850   :  { %v1714_v8 = vadd.f32 %v1713_v5, %v1710_v6 }
 0x851   :  { %v2267_v9 = vpop.eup %2266 }
 0x852   :  { %v1712_v10 = vmul.f32 %v2267_v9, %v1692_v7  ;;  %2138 = vmatprep.mubr.msk.f32.mxu1 %vm69_vm0, %v1714_v8 }
 0x854   :  { %v1715_v11 = vadd.f32 %v1713_v5, %v1712_v10 }
 0x856   :  { %2139 = vmatmul.mubr.msk.f32.vlgmr.msra.gmra.mrb[20].mxu1 %vm69_vm0, %v1715_v11 }
 0x929   :  { %v2140_v16 = vpop.f32.mrb[20].mxu1 }
 0x92a   :  { %v1805_v17 = vadd.f32 %v2140_v16, %v1962_v15  ;;  %v1799_v18 = vpop.f32.mrb[21].mxu1 }
 0x92b   :  { %v1800_v19 = vadd.f32 %v1962_v15, %v1799_v18 }
 0x92c   :  { %v1809_v23 = vmax.f32 %v1805_v17, 0.0 }
 0x92d   :  { %v1808_v20 = vmax.f32 %v1800_v19, 0.0 }
 0x92f   :  { %2157 = vmatprep.mubr.msk.f32.mxu0 %vm1825_vm14, %v1808_v20 }
 0x930   :  { %2158 = vmatmul.mubr.msk.f32.vlgmr.msra.gmra.mrb[16].mxu0 %vm1825_vm14, %v1809_v23 }
 0xa03   :  { %v2159_v25 = vpop.f32.mrb[16].mxu0 }
 0xa04   :  { %v1904_v26 = vadd.f32 %v2159_v25, %v1965_v24  ;;  %v1898_v27 = vpop.f32.mrb[17].mxu0 }
 0xa05   :  { %v1899_v49 = vadd.f32 %v1965_v24, %v1898_v27 }
 0xa06   :  { %v1908_v1 = vadd.f32 %v1904_v26, %v2607_v21 }
 0xa07   :  { %v1907_v0 = vadd.f32 %v1899_v49, %v2609_v22 }
 0xa08   :  { %1910 = vst.msk [vmem:[#allocation8 + $0x8] sm:$0xff] %vm69_vm0, %v1908_v1 }
 0xa09   :  { %1909 = vst.msk [vmem:[#allocation8] sm:$0xff] %vm69_vm0, %v1907_v0 }
 0xa0a   :  { %2313 = shalt.err (!%p2310_p3)
}
 0xa0b   :  { %s2314_s27 = scalar_lea.hbm %s2697_s10, 256 }
 0xa0c   :  { %p2315_p4 = scmp.ne.s32.totalorder %s2697_s10, %s2314_s27  ;;  %p2318_p5 = scmp.lt.u32.totalorder %s2314_s27, %s2697_s10 }
 0xa0e   :  { %p2320_p6 = pnand %p2318_p5, %p2315_p4 }
 0xa10   :  { %2323 = shalt.err (!%p2320_p6)
}
 0xa11   :  { %1922 = dma.vmem_to_hbm [thread:$0]  %s1917_s24, 256, %s2697_s10, [#allocation5], %s2331_s9, %s2331_s9, %s2332_s26  }
 0xa12   :  { %2328 = dma.done.wait [#allocation5], 256  }
 0xa13   :  { %2329 = vsyncadd [#allocation5], 4294967040 }
 0xa14   :  { %1926 = vsyncpa [#allocation4], 1 }
 0xa15   :  { %1927 = vsyncpa [#allocation5], 1 }
 0xa16   :  { %1928 = vsyncpa [#allocation6], 1 }

</bundles_post_ra>
